<compile_context>
chip_gen: v7x
topology: tpu7x:2x2x1
jax: 0.10.0
libtpu: 0.0.40
codegen_flags: <defaults>
</compile_context>

<pallas_src>
import functools

import jax
import jax.numpy as jnp
from jax.experimental import pallas as pl
from jax.experimental.pallas import tpu as pltpu

LN_EPS = 1e-5


def _patch_embed_kernel(x_ref, w_ref, b_ref, g_ref, be_ref, o_ref, *, apply_norm):
    # x_ref: (tm, K) patch rows | w_ref: (K, E) | b_ref/g_ref/be_ref: (1, E)
    # MXU matmul with native-dtype operands and f32 accumulation.
    y = jnp.dot(x_ref[...], w_ref[...], preferred_element_type=jnp.float32)
    y = y + b_ref[...].astype(jnp.float32)

    if apply_norm:
        # LayerNorm over the E (lane) dim, biased variance like torch.
        # One-pass variance (E[x^2] - mean^2, clamped) halves XLU reductions.
        mean = jnp.mean(y, axis=-1, keepdims=True)
        var = jnp.maximum(
            jnp.mean(y * y, axis=-1, keepdims=True) - mean * mean, 0.0
        )
        y = (y - mean) * jax.lax.rsqrt(var + LN_EPS)
        y = y * g_ref[...].astype(jnp.float32) + be_ref[...].astype(jnp.float32)

    o_ref[...] = y.astype(o_ref.dtype)


def _choose_tm(M, sub, tm_target):
    """Pick a row tile: sublane-aligned, prefers dividing M (no tail pad) and
    >= 2 grid steps (so v7x's two TensorCores both get work)."""
    tm_max = max(sub, (min(tm_target, M) // sub) * sub)
    if M >= 2 * sub:
        tm_max = min(tm_max, max(sub, (M // (2 * sub)) * sub))
    for tm in range(tm_max, sub - 1, -sub):
        if M % tm == 0:
            return tm
    # No clean divisor: ragged last block handled by Pallas masked load/store.
    return tm_max


def patch_embed_pallas(x, conv_w, conv_b, gamma, beta, *, patch_size, apply_norm,
                       io_dtype=None, tm_target=1024):
    """x: (B, Cin, H, W); conv_w: (E, Cin, P, P); conv_b/gamma/beta: (E,).

    Returns (B, N, E) with N = (H/P) * (W/P), dtype io_dtype (default: x.dtype).
    """
    B, Cin, H, W = x.shape
    P = patch_size
    assert H % P == 0 and W % P == 0, "image size must be divisible by patch size"
    Hp, Wp = H // P, W // P
    E = conv_w.shape[0]
    K = Cin * P * P
    N = Hp * Wp
    M = B * N

    io_dtype = jnp.dtype(io_dtype) if io_dtype is not None else jnp.dtype(x.dtype)

    # --- glue: non-overlapping patch extraction (pure layout, zero FLOPs) ---
    xp = x.reshape(B, Cin, Hp, P, Wp, P)
    xp = xp.transpose(0, 2, 4, 1, 3, 5)              # (B, Hp, Wp, Cin, P, P)
    x2d = xp.reshape(M, K).astype(io_dtype)          # (M, K) patch rows

    # Conv weight (E, Cin, P, P) -> (K, E): kernel does a plain row-major matmul.
    w2d = conv_w.reshape(E, K).T.astype(io_dtype)
    # Small per-feature params stay f32 (LN / bias math is f32 in-kernel).
    b2d = conv_b.reshape(1, E).astype(jnp.float32)
    g2d = gamma.reshape(1, E).astype(jnp.float32)
    be2d = beta.reshape(1, E).astype(jnp.float32)

    sub = 16 if io_dtype == jnp.bfloat16 else 8      # dtype-aware sublane pack
    tm = _choose_tm(M, sub, tm_target)
    grid_m = pl.cdiv(M, tm)

    isz = io_dtype.itemsize
    cost = pl.CostEstimate(
        flops=2 * M * K * E,
        transcendentals=M if apply_norm else 0,
        bytes_accessed=(M * K + K * E + M * E) * isz + 3 * E * 4,
    )

    kernel = functools.partial(_patch_embed_kernel, apply_norm=apply_norm)

    out2d = pl.pallas_call(
        kernel,
        out_shape=jax.ShapeDtypeStruct((M, E), io_dtype),
        grid_spec=pltpu.PrefetchScalarGridSpec(
            num_scalar_prefetch=0,
            grid=(grid_m,),
            in_specs=[
                pl.BlockSpec((tm, K), lambda i: (i, 0)),    # patch rows
                pl.BlockSpec((K, E), lambda i: (0, 0)),     # projection weight
                pl.BlockSpec((1, E), lambda i: (0, 0)),     # conv bias
                pl.BlockSpec((1, E), lambda i: (0, 0)),     # LN gamma
                pl.BlockSpec((1, E), lambda i: (0, 0)),     # LN beta
            ],
            out_specs=pl.BlockSpec((tm, E), lambda i: (i, 0)),
        ),
        compiler_params=pltpu.CompilerParams(
            dimension_semantics=("parallel",),
            # allow XLA to fuse the patch-extraction transpose / cast into the
            # input DMA of the first operand (avoids an extra HBM round trip).
            allow_input_fusion=[True, False, False, False, False],
        ),
        cost_estimate=cost,
    )(x2d, w2d, b2d, g2d, be2d)

    return out2d.reshape(B, N, E)


def patch_embed_ref(x, conv_w, conv_b, gamma, beta, *, patch_size, apply_norm):
    """Pure-JAX f32 reference mirroring the PyTorch forward."""
    B, Cin, H, W = x.shape
    P = patch_size
    Hp, Wp = H // P, W // P
    E = conv_w.shape[0]
    K = Cin * P * P
    xp = (x.reshape(B, Cin, Hp, P, Wp, P)
           .transpose(0, 2, 4, 1, 3, 5)
           .reshape(B, Hp * Wp, K)).astype(jnp.float32)
    y = jnp.einsum("bnk,ek->bne", xp, conv_w.reshape(E, K).astype(jnp.float32))
    y = y + conv_b.astype(jnp.float32)
    if apply_norm:
        mean = jnp.mean(y, axis=-1, keepdims=True)
        var = jnp.mean((y - mean) ** 2, axis=-1, keepdims=True)
        y = (y - mean) / jnp.sqrt(var + LN_EPS)
        y = y * gamma.astype(jnp.float32) + beta.astype(jnp.float32)
    return y


if __name__ == "__main__":
    # Small PatchEmbed config: img_size=16, input_dim=4, patch_size=4, embed_dim=128
    img_size = 16
    input_dim = 4
    patch_size = 4
    embed_dim = 128     # lane-dense: 128 == TPU lane width
    B = 2
    N = (img_size // patch_size) ** 2
    K = input_dim * patch_size * patch_size

    key = jax.random.PRNGKey(0)
    kx, kw, kb, kg, kbe = jax.random.split(key, 5)

    x = jax.random.normal(kx, (B, input_dim, img_size, img_size), dtype=jnp.float32)

    # Deterministic synthetic parameters (not a checkpoint load).
    conv_w = (jax.random.normal(
        kw, (embed_dim, input_dim, patch_size, patch_size), dtype=jnp.float32)
        * (1.0 / jnp.sqrt(float(K))))
    conv_b = 0.02 * jax.random.normal(kb, (embed_dim,), dtype=jnp.float32)
    gamma = jnp.ones((embed_dim,), jnp.float32) \
        + 0.1 * jax.random.normal(kg, (embed_dim,), jnp.float32)
    beta = 0.1 * jax.random.normal(kbe, (embed_dim,), jnp.float32)

    # Exercise both forward branches (with / without norm) in f32, plus the
    # bandwidth-optimized bf16 I/O path (accumulation stays f32 in-kernel).
    configs = [
        (True, None, 1e-3, 1e-3),
        (False, None, 1e-3, 1e-3),
        (True, jnp.bfloat16, 5e-2, 5e-2),
        (False, jnp.bfloat16, 5e-2, 5e-2),
    ]
    for apply_norm, io_dtype, atol, rtol in configs:
        fn = jax.jit(functools.partial(
            patch_embed_pallas, patch_size=patch_size, apply_norm=apply_norm,
            io_dtype=io_dtype))
        out = jax.block_until_ready(fn(x, conv_w, conv_b, gamma, beta))
        ref = patch_embed_ref(x, conv_w, conv_b, gamma, beta,
                              patch_size=patch_size, apply_norm=apply_norm)
        assert out.shape == (B, N, embed_dim), out.shape
        assert jnp.allclose(out.astype(jnp.float32), ref, atol=atol, rtol=rtol), \
            f"mismatch vs reference (apply_norm={apply_norm}, io_dtype={io_dtype})"

    print("KERNEL_OK")
</pallas_src>

<mosaic_0001>
module attributes {stable_mosaic.version = 11 : i64} {
  func.func @_patch_embed_kernel(%arg0: i32, %arg1: memref<16x64xf32, #tpu.memory_space<vmem>>, %arg2: memref<64x128xf32, #tpu.memory_space<vmem>>, %arg3: memref<1x128xf32, #tpu.memory_space<vmem>>, %arg4: memref<1x128xf32, #tpu.memory_space<vmem>>, %arg5: memref<1x128xf32, #tpu.memory_space<vmem>>, %arg6: memref<16x128xf32, #tpu.memory_space<vmem>>) attributes {dimension_semantics = [#tpu.dimension_semantics<parallel>], iteration_bounds = array<i64: 2>, scalar_prefetch = 0 : i64, scratch_operands = 0 : i64, tpu.core_type = #tpu.core_type<tc>, window_params = [{transform_indices = @transform_0, window_bounds = array<i64: 16, 64>}, {pipeline_mode = #tpu.pipeline_mode<synchronous>, transform_indices = @transform_1, window_bounds = array<i64: 64, 128>}, {pipeline_mode = #tpu.pipeline_mode<synchronous>, transform_indices = @transform_2, window_bounds = array<i64: 1, 128>}, {pipeline_mode = #tpu.pipeline_mode<synchronous>, transform_indices = @transform_3, window_bounds = array<i64: 1, 128>}, {pipeline_mode = #tpu.pipeline_mode<synchronous>, transform_indices = @transform_4, window_bounds = array<i64: 1, 128>}, {transform_indices = @transform_5, window_bounds = array<i64: 16, 128>}]} {
    %c0 = arith.constant 0 : index
    %c0_0 = arith.constant 0 : index
    %0 = vector.load %arg1[%c0, %c0_0] : memref<16x64xf32, #tpu.memory_space<vmem>>, vector<16x64xf32>
    %c0_1 = arith.constant 0 : index
    %c0_2 = arith.constant 0 : index
    %1 = vector.load %arg2[%c0_1, %c0_2] : memref<64x128xf32, #tpu.memory_space<vmem>>, vector<64x128xf32>
    %cst = arith.constant dense<0.000000e+00> : vector<16x128xf32>
    %2 = tpu.matmul %0, %1, %cst {dimension_numbers = #tpu.dot_dimension_numbers<[1], [0], [0], [1], [0, 0, 1, 1], [], []>} : vector<16x64xf32>, vector<64x128xf32>, vector<16x128xf32> -> vector<16x128xf32>
    %c0_3 = arith.constant 0 : index
    %c0_4 = arith.constant 0 : index
    %3 = vector.load %arg3[%c0_3, %c0_4] : memref<1x128xf32, #tpu.memory_space<vmem>>, vector<1x128xf32>
    %4 = vector.broadcast %3 : vector<1x128xf32> to vector<16x128xf32>
    %5 = arith.addf %2, %4 : vector<16x128xf32>
    %cst_5 = arith.constant dense<0.000000e+00> : vector<16xf32>
    %6 = vector.multi_reduction <add>, %5, %cst_5 [1] : vector<16x128xf32> to vector<16xf32>
    %7 = vector.shape_cast %6 : vector<16xf32> to vector<16x1xf32>
    %cst_6 = arith.constant 1.280000e+02 : f32
    %8 = vector.broadcast %cst_6 : f32 to vector<16x1xf32>
    %9 = arith.divf %7, %8 : vector<16x1xf32>
    %10 = arith.mulf %5, %5 : vector<16x128xf32>
    %cst_7 = arith.constant dense<0.000000e+00> : vector<16xf32>
    %11 = vector.multi_reduction <add>, %10, %cst_7 [1] : vector<16x128xf32> to vector<16xf32>
    %12 = vector.shape_cast %11 : vector<16xf32> to vector<16x1xf32>
    %cst_8 = arith.constant 1.280000e+02 : f32
    %13 = vector.broadcast %cst_8 : f32 to vector<16x1xf32>
    %14 = arith.divf %12, %13 : vector<16x1xf32>
    %15 = arith.mulf %9, %9 : vector<16x1xf32>
    %16 = arith.subf %14, %15 : vector<16x1xf32>
    %cst_9 = arith.constant 0.000000e+00 : f32
    %17 = vector.broadcast %cst_9 : f32 to vector<16x1xf32>
    %18 = arith.maximumf %16, %17 : vector<16x1xf32>
    %19 = vector.broadcast %9 : vector<16x1xf32> to vector<16x128xf32>
    %20 = arith.subf %5, %19 : vector<16x128xf32>
    %cst_10 = arith.constant 9.99999974E-6 : f32
    %21 = vector.broadcast %cst_10 : f32 to vector<16x1xf32>
    %22 = arith.addf %18, %21 : vector<16x1xf32>
    %23 = math.rsqrt %22 : vector<16x1xf32>
    %24 = vector.broadcast %23 : vector<16x1xf32> to vector<16x128xf32>
    %25 = arith.mulf %20, %24 : vector<16x128xf32>
    %c0_11 = arith.constant 0 : index
    %c0_12 = arith.constant 0 : index
    %26 = vector.load %arg4[%c0_11, %c0_12] : memref<1x128xf32, #tpu.memory_space<vmem>>, vector<1x128xf32>
    %27 = vector.broadcast %26 : vector<1x128xf32> to vector<16x128xf32>
    %28 = arith.mulf %25, %27 : vector<16x128xf32>
    %c0_13 = arith.constant 0 : index
    %c0_14 = arith.constant 0 : index
    %29 = vector.load %arg5[%c0_13, %c0_14] : memref<1x128xf32, #tpu.memory_space<vmem>>, vector<1x128xf32>
    %30 = vector.broadcast %29 : vector<1x128xf32> to vector<16x128xf32>
    %31 = arith.addf %28, %30 : vector<16x128xf32>
    %c0_15 = arith.constant 0 : index
    %c0_16 = arith.constant 0 : index
    %32 = vector.load %arg6[%c0_15, %c0_16] : memref<16x128xf32, #tpu.memory_space<vmem>>, vector<16x128xf32>
    tpu.vector_store %arg6[%c0_15, %c0_16], %31 {strides = array<i32>} : memref<16x128xf32, #tpu.memory_space<vmem>>, vector<16x128xf32>,
    return
  }
  func.func @transform_0(%arg0: i32) -> (i32, i32) {
    %c0_i32 = arith.constant 0 : i32
    %c0_i32_0 = arith.constant 0 : i32
    return %arg0, %c0_i32 : i32, i32
  }
  func.func @transform_1(%arg0: i32) -> (i32, i32) {
    %c0_i32 = arith.constant 0 : i32
    %c0_i32_0 = arith.constant 0 : i32
    %c0_i32_1 = arith.constant 0 : i32
    return %c0_i32, %c0_i32_0 : i32, i32
  }
  func.func @transform_2(%arg0: i32) -> (i32, i32) {
    %c0_i32 = arith.constant 0 : i32
    %c0_i32_0 = arith.constant 0 : i32
    %c0_i32_1 = arith.constant 0 : i32
    return %c0_i32, %c0_i32_0 : i32, i32
  }
  func.func @transform_3(%arg0: i32) -> (i32, i32) {
    %c0_i32 = arith.constant 0 : i32
    %c0_i32_0 = arith.constant 0 : i32
    %c0_i32_1 = arith.constant 0 : i32
    return %c0_i32, %c0_i32_0 : i32, i32
  }
  func.func @transform_4(%arg0: i32) -> (i32, i32) {
    %c0_i32 = arith.constant 0 : i32
    %c0_i32_0 = arith.constant 0 : i32
    %c0_i32_1 = arith.constant 0 : i32
    return %c0_i32, %c0_i32_0 : i32, i32
  }
  func.func @transform_5(%arg0: i32) -> (i32, i32) {
    %c0_i32 = arith.constant 0 : i32
    %c0_i32_0 = arith.constant 0 : i32
    return %arg0, %c0_i32 : i32, i32
  }
}

</mosaic_0001>

<bundles_post_ra>
// kernel: patch_embed_pallas.1
= control target key start
LH: loop header
LB: loop body
LE: loop exit
PB: predicated region body
PF: predicated region fallthrough
CT: control target
= control target key end

     0   :  { %10 = vsyncpa [#allocation3], 0  ;;  %s790_s0 = inlined_call_operand.vmem [shape: f32[32,64], index: 0, kind: input, shape index: {}]   ;;  %s791_s1 = inlined_call_operand.vmem [shape: f32[64,128], index: 1, kind: input, shape index: {}]   ;;  %s792_s2 = inlined_call_operand.vmem [shape: f32[1,128], index: 2, kind: input, shape index: {}]   ;;  %s793_s3 = inlined_call_operand.vmem [shape: f32[1,128], index: 3, kind: input, shape index: {}]   ;;  %s794_s4 = inlined_call_operand.vmem [shape: f32[1,128], index: 4, kind: input, shape index: {}]   ;;  %s795_s5 = inlined_call_operand.hbm [shape: f32[32,128], index: 5, kind: output, shape index: {}]  }
   0x1   :  { %12 = vsyncpa [#allocation3 + $0x1], 0  ;;  %s655_s18 = smov 0   ;;  %s657_s19 = smov 0  }
   0x2   :  { %s659_s20 = smov 0   ;;  %s661_s21 = smov 0  }
   0x3 LB: > { %s676_s22 = sadd.s32 4294967295, %s620_s21   ;;  %s450_s23 = sadd.s32 4294967294, %s620_s21   ;;  %s620_s21 = sphi %s661_s21, %s801_s21   ;;  %s616_s20 = sphi %s659_s20, %s800_s20   ;;  %s612_s19 = sphi %s657_s19, %s799_s19   ;;  %s608_s18 = sphi %s655_s18, %s798_s18  }
   0x4   : > { %s680_s24 = sadd.s32 1, %s620_s21   ;;  %s135_s25 = sadd.s32 1, %s616_s20 }
   0x5   : > { %s132_s26 = ssub.s32 %s620_s21, %s680_s24  ;;  %p145_p0 = scmp.ne.s32.totalorder %s616_s20, %s612_s19 }
   0x6   : > { %p133_p1 = scmp.eq.s32.totalorder %s132_s26, 0  ;;  %p146_p2 = scmp.eq.s32.totalorder %s676_s22, 1 }
   0x7   : > { %p151_p3 = scmp.ne.s32.totalorder %s612_s19, %s608_s18  ;;  %p152_p4 = scmp.eq.s32.totalorder %s450_s23, 1 }
   0x8   : > { %s691_s27 = scalar_select %p133_p1, %s616_s20, %s135_s25  }
   0x9   : > { %p693_p5 = por %p146_p2, %p145_p0  ;;  %p697_p6 = por %p152_p4, %p151_p3 }
   0xa   : > { %p453_p7 = scmp.ge.s32.totalorder %s620_s21, 1  ;;  %p191_p8 = scmp.lt.s32.totalorder %s620_s21, 3 }
   0xc   : > { %p192_p9 = pnand %p453_p7, %p191_p8 }
   0xd   : > { %v228_v0 = vld [vmem:[%s791_s1] sm:$0xff] (!%p192_p9)  ;;  %v229_v1 = vld [vmem:[%s791_s1 + $0x8] sm:$0xff] (!%p192_p9)  ;;  %v230_v2 = vld [vmem:[%s791_s1 + $0x10] sm:$0xff] (!%p192_p9)  ;;  %s455_s11 = sshll.u32 (!%p192_p9), %s676_s22, 1  ;;  %vm243_vm0 = vcmask (!%p192_p9), 523264   ;;  %s216_s12 = sand.u32 (!%p192_p9), 1, %s612_s19  }
   0xe   : > { %195 = sbr.rel (%p192_p9) target bundleno = 435 (0x1b3), region = 40  ;;  %v497_v3 = vpack.c.bf16 (!%p192_p9), %v229_v1, %v228_v0  ;;  %v231_v4 = vld [vmem:[%s791_s1 + $0x18] sm:$0xff] (!%p192_p9)  ;;  %p220_p10 = scmp.lt.s32.totalorder (!%p192_p9), %s455_s11, 3  ;;  %v232_v6 = vld [vmem:[%s791_s1 + $0x20] sm:$0xff] (!%p192_p9)  ;;  %v233_v7 = vld [vmem:[%s791_s1 + $0x28] sm:$0xff] (!%p192_p9) }
   0xf   : > { %v501_v5 = vpack.c.bf16 (!%p192_p9), %v231_v4, %v230_v2  ;;  %v505_v8 = vpack.c.bf16 (!%p192_p9), %v233_v7, %v232_v6  ;;  %v234_v9 = vld [vmem:[%s791_s1 + $0x30] sm:$0xff] (!%p192_p9)  ;;  %v235_v10 = vld [vmem:[%s791_s1 + $0x38] sm:$0xff] (!%p192_p9)  ;;  %v457_v14 = vld [vmem:[%s792_s2] ss:$0 sm:$0xff] (!%p192_p9)  ;;  %s454_s15 = sshll.u32 (!%p192_p9), %s216_s12, 4  ;;  %s749_s8 = scalar_lea.sflag (!%p192_p9), [#allocation3], %s216_s12 }
  0x10   : > { %498 = vmatprep.subr.bf16.mxu0 (!%p192_p9), %v497_v3  ;;  %v509_v12 = vpack.c.bf16 (!%p192_p9), %v235_v10, %v234_v9  ;;  %v460_v39 = vld [vmem:[%s793_s3] ss:$0 sm:$0xff] (!%p192_p9)  ;;  %s218_s25 = scalar_lea.vmem (!%p192_p9), [#allocation2], %s454_s15 }
  0x11   : > { %500 = vmatpush3.bf16.msra.mxu0 (!%p192_p9), %v497_v3  ;;  %v461_v41 = vld [vmem:[%s794_s4] ss:$0 sm:$0xff] (!%p192_p9)  ;;  %s388_s26 = sshll.u32 (!%p192_p9), %s218_s25, 4  ;;  %s747_s26 = int_to_ptr.vmem [resolvable:$true] %s388_s26 }
  0x12   : > { %502 = vmatprep.subr.bf16.mxu0 (!%p192_p9), %v501_v5 }
  0x15   : > { %s803_s11 = smov (!%p220_p10, %s455_s11), 3  ;;  %504 = vmatpush3.bf16.msra.mxu0 %v501_v5 }
  0x16   : > { %s456_s23 = sshll.u32 %s803_s11, 3  ;;  %506 = vmatprep.subr.bf16.mxu0 %v505_v8 }
  0x17   : > { %s223_s9 = scalar_lea.vmem %s790_s0, %s456_s23  ;;  %s467_s23 = sshll.u32 %s676_s22, 8 }
  0x18   : > { %v226_v11 = vld [vmem:[%s223_s9] sm:$0xff]  ;;  %v227_v13 = vld [vmem:[%s223_s9 + $0x8] sm:$0xff]  ;;  %s745_s7 = scalar_lea.hbm %s795_s5, %s467_s23  ;;  %s558_s9 = scalar_lea.vmem %s747_s26, 256 }
  0x19   : > { %494 = vmatprep.mubr.msk.f32.mxu0 %vm243_vm0, %v226_v11  ;;  %508 = vmatpush3.bf16.msra.mxu0 %v505_v8  ;;  %p559_p11 = scmp.ne.s32.totalorder %s747_s26, %s558_s9  ;;  %s622_s22 = smov [#allocation2]  }
  0x1a   : > { %510 = vmatprep.subr.bf16.mxu0 %v509_v12  ;;  %s562_s10 = sshll.u32 %s622_s22, 4  ;;  %s563_s10 = int_to_ptr.vmem [resolvable:$false] %s562_s10 }
  0x1b   : > { %p560_p12 = pnand %p559_p11, %p693_p5  ;;  %s564_s11 = scalar_lea.vmem %s563_s10, 512 }
  0x1c   : > { %p565_p0 = scmp.lt.s32.totalorder %s747_s26, %s563_s10  ;;  %p566_p1 = scmp.lt.s32.totalorder %s564_s11, %s558_s9 }
  0x1d   : > { %512 = vmatpush3.bf16.msra.mxu0 %v509_v12  ;;  %p561_p13 = pneg %p560_p12 }
  0x1e   : > { %p567_p2 = por %p566_p1, %p565_p0 }
  0x20   : > { %495 = vmatmul.mubr.msk.f32.vlgmr.msra.gmra.mrb[0].mxu0 %vm243_vm0, %v227_v13  ;;  %p568_p3 = pnand %p567_p2, %p561_p13 }
  0xf3   : > { %v496_v15 = vpop.f32.mrb[0].mxu0 }
  0xf4   : > { %v316_v16 = vpop.f32.mrb[1].mxu0  ;;  %v322_v18 = vadd.f32 %v496_v15, %v457_v14 }
  0xf5   : > { %v317_v17 = vadd.f32 %v457_v14, %v316_v16 }
  0xf6   : > { %v333_v20 = vmul.f32 %v322_v18, %v322_v18 }
  0xf7   : > { %325 = vadd.xlane.f32.xlu0 %v317_v17  ;;  %v332_v19 = vmul.f32 %v317_v17, %v317_v17 }
  0xf9   : > { %334 = vadd.xlane.f32.xlu1 %v332_v19 }
  0xfb   : > { %327 = vadd.xlane.f32.xlu0 %v322_v18 }
  0xfd   : > { %336 = vadd.xlane.f32.xlu1 %v333_v20 }
 0x184   : > { %v326_v21 = vpop.xlane.xlu0 %325 }
 0x185   : > { %v330_v22 = vmul.f32 0.0078125, %v326_v21 }
 0x186   : > { %v335_v23 = vpop.xlane.xlu1 %334 }
 0x187   : > { %v340_v24 = vmul.f32 %v330_v22, %v330_v22  ;;  %v338_v25 = vmul.f32 0.0078125, %v335_v23  ;;  %v346_v37 = vsub.f32 %v317_v17, %v330_v22 }
 0x188   : > { %v328_v26 = vpop.xlane.xlu0 %327 }
 0x189   : > { %v342_v27 = vsub.f32 %v338_v25, %v340_v24  ;;  %v331_v28 = vmul.f32 0.0078125, %v328_v26 }
 0x18a   : > { %v337_v29 = vpop.xlane.xlu1 %336 }
 0x18b   : > { %v344_v30 = vmax.f32 %v342_v27, 0.0  ;;  %v341_v31 = vmul.f32 %v331_v28, %v331_v28  ;;  %v339_v32 = vmul.f32 0.0078125, %v337_v29  ;;  %v347_v42 = vsub.f32 %v322_v18, %v331_v28 }
 0x18d   : > { %v348_v33 = vadd.f32 1e-05, %v344_v30  ;;  %v343_v34 = vsub.f32 %v339_v32, %v341_v31 }
 0x18f   : > { %554 = vrsqrt.f32 %v348_v33  ;;  %v345_v35 = vmax.f32 %v343_v34, 0.0 }
 0x191   : > { %v349_v36 = vadd.f32 1e-05, %v345_v35 }
 0x193   : > { %556 = vrsqrt.f32 %v349_v36 }
 0x199   : > { %v555_v38 = vpop.eup %554 }
 0x19a   : > { %v352_v40 = vmul.f32 %v555_v38, %v346_v37 }
 0x19c   : > { %v361_v43 = vmul.f32 %v460_v39, %v352_v40 }
 0x19d   : > { %v557_v44 = vpop.eup %556 }
 0x19e   : > { %v353_v45 = vmul.f32 %v557_v44, %v347_v42  ;;  %v370_v46 = vadd.f32 %v461_v41, %v361_v43 }
 0x1a0   : > { %v362_v47 = vmul.f32 %v460_v39, %v353_v45  ;;  %372 = vst [vmem:[%s218_s25] sm:$0xff] %v370_v46 }
 0x1a2   : > { %v371_v48 = vadd.f32 %v461_v41, %v362_v47 }
 0x1a4   : > { %373 = vst [vmem:[%s218_s25 + $0x8] sm:$0xff] %v371_v48 }
 0x1a5   : > { %571 = shalt.err (!%p568_p3)
}
 0x1a6   : > { %s572_s12 = scalar_lea.hbm %s745_s7, 256  ;;  %s576_s15 = scalar_lea.hbm %s795_s5, 512 }
 0x1a7   : > { %p573_p4 = scmp.ne.s32.totalorder %s745_s7, %s572_s12  ;;  %p577_p9 = scmp.lt.u32.totalorder %s745_s7, %s795_s5 }
 0x1a8   : > { %p578_p10 = scmp.lt.u32.totalorder %s576_s15, %s572_s12  ;;  %p580_p12 = scmp.lt.u32.totalorder %s572_s12, %s745_s7 }
 0x1a9   : > { %p574_p7 = pnand %p573_p4, %p693_p5 }
 0x1aa   : > { %p579_p11 = por %p578_p10, %p577_p9 }
 0x1ab   : > { %p575_p8 = pneg %p574_p7 }
 0x1ac   : > { %p581_p13 = por %p580_p12, %p579_p11 }
 0x1ae   : > { %p582_p0 = pnand %p581_p13, %p575_p8 }
 0x1b0   : > { %585 = shalt.err (!%p582_p0)
}
 0x1b1   : > { %s623_s23 = smov 128   ;;  %s624_s25 = smov 8  }
 0x1b2   : > { %513 = dma.vmem_to_hbm [thread:$0]  (%p693_p5), %s747_s26, 256, %s745_s7, %s749_s8, %s623_s23, %s623_s23, %s624_s25  }
 0x1b3 PF: > { %p519_p1 = scmp.ge.s32.totalorder %s620_s21, 2  ;;  %s403_s30 = sand.u32 1, %s608_s18  }
 0x1b4   : > { %s404_s6 = scalar_lea.sflag [#allocation3], %s403_s30 }
 0x1b5   : > { %p516_p2 = pnand %p519_p1, %p697_p6 }
 0x1b7   : > { %603 = dma.done.wait (!%p516_p2), %s404_s6, 256  }
 0x1b8   : > { %605 = vsyncadd (!%p516_p2), %s404_s6, 4294967040  ;;  %p15_p3 = scmp.ge.s32.totalorder %s680_s24, 4   ;;  %s798_s18 = smov %s612_s19 }
 0x1b9   : > { %s799_s19 = smov %s616_s20  ;;  %s800_s20 = smov %s691_s27 }
 0x1ba   : > { %s801_s21 = smov %s680_s24  ;;  %17 = sbr.rel (!%p15_p3) target bundleno = 3 (0x3), region = 75 }
 0x1c1   :  { %409 = vsyncpa [#allocation3], 1 }
 0x1c2   :  { %411 = vsyncpa [#allocation3 + $0x1], 1 }

</bundles_post_ra>
